<compile_context>
chip_gen: v7x
topology: tpu7x:2x2x1
jax: 0.10.0
libtpu: 0.0.40
codegen_flags: <defaults>
</compile_context>

<pallas_src>
import functools
import math

import jax
import jax.numpy as jnp
from jax.experimental import pallas as pl
from jax.experimental.pallas import tpu as pltpu

_NEG_INF = -1e30
_VMEM_LIMIT_BYTES = 48 * 1024 * 1024   # conservative: fits v7x (64 MiB / TC)


def _round_up(x, m):
    return ((x + m - 1) // m) * m


# ---------------------------------------------------------------------------
# RoPE tables (mirror the PyTorch helpers exactly)
# ---------------------------------------------------------------------------
def precompute_freqs_cis(dim, end, theta=10000.0):
    freqs = 1.0 / (theta ** (jnp.arange(0, dim, 2)[: dim // 2].astype(jnp.float32) / dim))
    t = jnp.arange(end, dtype=jnp.float32)
    freqs = jnp.outer(t, freqs)
    return jnp.cos(freqs), jnp.sin(freqs)


def rotate_half(x):
    half = x.shape[-1] // 2
    return jnp.concatenate([-x[..., half:], x[..., :half]], axis=-1)


def build_rope_tables(cos, sin, position_ids, head_dim):
    """Seq gather + feature-dim zero-pad/truncate, as apply_rotary_pos_emb does."""
    cos = cos[position_ids]                       # [S, rope_dim // 2]
    sin = sin[position_ids]
    feat = cos.shape[-1]
    if feat < head_dim:                           # F.pad(..., (0, pad)) -> zeros
        cos = jnp.pad(cos, ((0, 0), (0, head_dim - feat)))
        sin = jnp.pad(sin, ((0, 0), (0, head_dim - feat)))
    elif feat > head_dim:
        cos = cos[:, :head_dim]
        sin = sin[:, :head_dim]
    return cos.astype(jnp.float32), sin.astype(jnp.float32)


# ---------------------------------------------------------------------------
# 1) fused linear projection:  y = x @ w + b
# ---------------------------------------------------------------------------
def _linear_kernel(x_ref, w_ref, b_ref, o_ref, acc_ref):
    @pl.when(pl.program_id(2) == 0)
    def _():
        acc_ref[...] = jnp.zeros_like(acc_ref)

    acc_ref[...] += jnp.dot(x_ref[...], w_ref[...],
                            preferred_element_type=jnp.float32)

    @pl.when(pl.program_id(2) == pl.num_programs(2) - 1)
    def _():
        o_ref[...] = (acc_ref[...] + b_ref[...].astype(jnp.float32)
                      ).astype(o_ref.dtype)


def linear(x, w, b, *, tm=256, tn=256, tk=512):
    """x: [R, H], w: [H, N], b: [N] -> x @ w + b of shape [R, N]."""
    R, H = x.shape
    N = w.shape[1]

    tm = min(tm, _round_up(R, 8))
    tk = min(tk, _round_up(H, 128))
    tn = min(tn, _round_up(N, 128))
    Rp, Hp, Np = _round_up(R, tm), _round_up(H, tk), _round_up(N, tn)

    xp = jnp.pad(x, ((0, Rp - R), (0, Hp - H)))
    wp = jnp.pad(w, ((0, Hp - H), (0, Np - N)))
    bp = jnp.pad(b, (0, Np - N)).reshape(1, Np)

    out = pl.pallas_call(
        _linear_kernel,
        out_shape=jax.ShapeDtypeStruct((Rp, Np), x.dtype),
        grid_spec=pltpu.PrefetchScalarGridSpec(
            num_scalar_prefetch=0,
            grid=(Rp // tm, Np // tn, Hp // tk),
            in_specs=[
                pl.BlockSpec((tm, tk), lambda i, j, kk: (i, kk)),
                pl.BlockSpec((tk, tn), lambda i, j, kk: (kk, j)),
                pl.BlockSpec((1, tn), lambda i, j, kk: (0, j)),
            ],
            out_specs=pl.BlockSpec((tm, tn), lambda i, j, kk: (i, j)),
            scratch_shapes=[pltpu.VMEM((tm, tn), jnp.float32)],
        ),
        compiler_params=pltpu.CompilerParams(
            dimension_semantics=("parallel", "parallel", "arbitrary"),
            vmem_limit_bytes=_VMEM_LIMIT_BYTES,
        ),
    )(xp, wp, bp)
    return out[:R, :N]


# ---------------------------------------------------------------------------
# 2) rotary position embedding kernel
# ---------------------------------------------------------------------------
def _rope_kernel(q_ref, k_ref, cos_ref, sin_ref, qo_ref, ko_ref, *, half):
    cos = cos_ref[...]                 # (ts, D) f32
    sin = sin_ref[...]                 # (ts, D) f32, sign-folded

    def _apply(x_ref, o_ref):
        x = x_ref[0].astype(jnp.float32)            # (ts, D)
        rot = pltpu.roll(x, shift=half, axis=1)     # rotate_half up to sign
        o_ref[0] = (x * cos + rot * sin).astype(o_ref.dtype)

    _apply(q_ref, qo_ref)
    _apply(k_ref, ko_ref)


def apply_rope(q, k, cos_t, sin_t, *, ts=512):
    """q, k: [B*H, S, D]; cos_t/sin_t: [S, D] f32 (already padded to head_dim)."""
    BH, S, D = q.shape
    assert D % 2 == 0
    half = D // 2

    # rotate_half(x) == roll(x, D//2, lanes) * sign, sign = [-1]*half + [+1]*half;
    # fold the sign into the sin table so the kernel has no lane select.
    sign = jnp.concatenate([-jnp.ones((half,), jnp.float32),
                            jnp.ones((D - half,), jnp.float32)])
    sin_eff = sin_t.astype(jnp.float32) * sign[None, :]
    cos_t = cos_t.astype(jnp.float32)

    ts = min(ts, _round_up(S, 8))
    Sp = _round_up(S, ts)
    qp = jnp.pad(q, ((0, 0), (0, Sp - S), (0, 0)))
    kp = jnp.pad(k, ((0, 0), (0, Sp - S), (0, 0)))
    cp = jnp.pad(cos_t, ((0, Sp - S), (0, 0)))
    sp = jnp.pad(sin_eff, ((0, Sp - S), (0, 0)))

    qk_spec = pl.BlockSpec((1, ts, D), lambda bh, si: (bh, si, 0))
    cs_spec = pl.BlockSpec((ts, D), lambda bh, si: (si, 0))

    qo, ko = pl.pallas_call(
        functools.partial(_rope_kernel, half=half),
        out_shape=(jax.ShapeDtypeStruct((BH, Sp, D), q.dtype),
                   jax.ShapeDtypeStruct((BH, Sp, D), k.dtype)),
        grid_spec=pltpu.PrefetchScalarGridSpec(
            num_scalar_prefetch=0,
            grid=(BH, Sp // ts),
            in_specs=[qk_spec, qk_spec, cs_spec, cs_spec],
            out_specs=(qk_spec, qk_spec),
        ),
        compiler_params=pltpu.CompilerParams(
            dimension_semantics=("parallel", "parallel"),
            vmem_limit_bytes=_VMEM_LIMIT_BYTES,
        ),
    )(qp, kp, cp, sp)
    return qo[:, :S], ko[:, :S]


# ---------------------------------------------------------------------------
# 3) causal flash attention (stand-in for NativeSparseAttention core)
# ---------------------------------------------------------------------------
def _flash_attn_kernel(q_ref, k_ref, v_ref, o_ref, m_sc, l_sc, acc_sc,
                       *, scale, tq, tkv):
    qi = pl.program_id(1)
    ki = pl.program_id(2)

    @pl.when(ki == 0)
    def _():
        m_sc[...] = jnp.full_like(m_sc, _NEG_INF)
        l_sc[...] = jnp.zeros_like(l_sc)
        acc_sc[...] = jnp.zeros_like(acc_sc)

    # Skip key blocks entirely above the causal diagonal.
    @pl.when(ki * tkv <= qi * tq + (tq - 1))
    def _():
        q = q_ref[0].astype(jnp.float32) * scale                  # (tq, D)
        k = k_ref[0].astype(jnp.float32)                          # (tkv, D)
        s = jnp.dot(q, k.T, preferred_element_type=jnp.float32)   # (tq, tkv)

        row = qi * tq + jax.lax.broadcasted_iota(jnp.int32, (tq, tkv), 0)
        col = ki * tkv + jax.lax.broadcasted_iota(jnp.int32, (tq, tkv), 1)
        s = jnp.where(row >= col, s, _NEG_INF)

        m_prev = m_sc[...]
        m_new = jnp.maximum(m_prev, s.max(axis=-1, keepdims=True))
        alpha = jnp.exp(m_prev - m_new)
        p = jnp.exp(s - m_new)
        l_sc[...] = alpha * l_sc[...] + p.sum(axis=-1, keepdims=True)
        acc_sc[...] = alpha * acc_sc[...] + jnp.dot(
            p.astype(v_ref.dtype), v_ref[0], preferred_element_type=jnp.float32)
        m_sc[...] = m_new

    @pl.when(ki == pl.num_programs(2) - 1)
    def _():
        o_ref[0] = (acc_sc[...] * pl.reciprocal(l_sc[...], approx=True)
                    ).astype(o_ref.dtype)


def flash_attention_causal(q, k, v, *, block=256):
    """q, k, v: [B*H, S, D] -> causal attention output [B*H, S, D]."""
    BH, S, D = q.shape
    scale = 1.0 / math.sqrt(D)

    blk = min(block, _round_up(S, 8))
    Sp = _round_up(S, blk)
    pad = ((0, 0), (0, Sp - S), (0, 0))
    qp, kp, vp = jnp.pad(q, pad), jnp.pad(k, pad), jnp.pad(v, pad)

    q_spec = pl.BlockSpec((1, blk, D), lambda bh, qi, ki: (bh, qi, 0))
    kv_spec = pl.BlockSpec((1, blk, D), lambda bh, qi, ki: (bh, ki, 0))
    o_spec = pl.BlockSpec((1, blk, D), lambda bh, qi, ki: (bh, qi, 0))

    out = pl.pallas_call(
        functools.partial(_flash_attn_kernel, scale=scale, tq=blk, tkv=blk),
        out_shape=jax.ShapeDtypeStruct((BH, Sp, D), q.dtype),
        grid_spec=pltpu.PrefetchScalarGridSpec(
            num_scalar_prefetch=0,
            grid=(BH, Sp // blk, Sp // blk),
            in_specs=[q_spec, kv_spec, kv_spec],
            out_specs=o_spec,
            scratch_shapes=[
                pltpu.VMEM((blk, 1), jnp.float32),
                pltpu.VMEM((blk, 1), jnp.float32),
                pltpu.VMEM((blk, D), jnp.float32),
            ],
        ),
        compiler_params=pltpu.CompilerParams(
            dimension_semantics=("parallel", "parallel", "arbitrary"),
            vmem_limit_bytes=_VMEM_LIMIT_BYTES,
        ),
    )(qp, kp, vp)
    return out[:, :S]


# ---------------------------------------------------------------------------
# NSAAttention forward (Pallas) and pure-JAX reference
# ---------------------------------------------------------------------------
def nsa_attention_forward(x, params, num_heads, head_dim, rope_dim_per_head,
                          max_position_embeddings):
    B, S, H = x.shape
    N = num_heads * head_dim
    position_ids = jnp.arange(S)

    max_seq = max(S, max_position_embeddings)
    cos_full, sin_full = precompute_freqs_cis(rope_dim_per_head, max_seq)
    cos_t, sin_t = build_rope_tables(cos_full, sin_full, position_ids, head_dim)

    # Fused q/k/v projection through one Pallas matmul.
    w = jnp.concatenate([params["wq"], params["wk"], params["wv"]], axis=1)
    b = jnp.concatenate([params["bq"], params["bk"], params["bv"]], axis=0)
    qkv = linear(x.reshape(B * S, H), w, b)                 # [B*S, 3N]
    q, k, v = jnp.split(qkv, 3, axis=-1)

    def to_bhsd(t):
        return (t.reshape(B, S, num_heads, head_dim)
                 .transpose(0, 2, 1, 3)
                 .reshape(B * num_heads, S, head_dim))

    q, k, v = to_bhsd(q), to_bhsd(k), to_bhsd(v)

    q, k = apply_rope(q, k, cos_t, sin_t)

    # TODO(synk): NativeSparseAttention ("self.nsa") internals are not in the
    # provided source; dense causal flash attention is used as the core.
    o = flash_attention_causal(q, k, v)                     # [B*H, S, D]

    out = (o.reshape(B, num_heads, S, head_dim)
             .transpose(0, 2, 1, 3)
             .reshape(B, S, N))
    # attention_dropout defaults to 0.0 (eval) -> identity.
    kv_cache = (k.reshape(B, num_heads, S, head_dim).transpose(0, 2, 1, 3),
                v.reshape(B, num_heads, S, head_dim).transpose(0, 2, 1, 3))
    return out, kv_cache


def nsa_attention_ref(x, params, num_heads, head_dim, rope_dim_per_head,
                      max_position_embeddings):
    B, S, H = x.shape
    xf = x.astype(jnp.float32)
    q = xf @ params["wq"].astype(jnp.float32) + params["bq"].astype(jnp.float32)
    k = xf @ params["wk"].astype(jnp.float32) + params["bk"].astype(jnp.float32)
    v = xf @ params["wv"].astype(jnp.float32) + params["bv"].astype(jnp.float32)
    q = q.reshape(B, S, num_heads, head_dim)
    k = k.reshape(B, S, num_heads, head_dim)
    v = v.reshape(B, S, num_heads, head_dim)

    position_ids = jnp.arange(S)
    max_seq = max(S, max_position_embeddings)
    cos_full, sin_full = precompute_freqs_cis(rope_dim_per_head, max_seq)
    cos_t, sin_t = build_rope_tables(cos_full, sin_full, position_ids, head_dim)
    c = cos_t[None, :, None, :]
    s = sin_t[None, :, None, :]
    q = q * c + rotate_half(q) * s
    k = k * c + rotate_half(k) * s

    qt, kt, vt = (t.transpose(0, 2, 1, 3) for t in (q, k, v))
    logits = jnp.einsum("bhqd,bhkd->bhqk", qt, kt) / math.sqrt(head_dim)
    mask = jnp.tril(jnp.ones((S, S), dtype=bool))
    logits = jnp.where(mask[None, None], logits, _NEG_INF)
    p = jax.nn.softmax(logits, axis=-1)
    out = jnp.einsum("bhqk,bhkd->bhqd", p, vt)
    return (out.transpose(0, 2, 1, 3)
               .reshape(B, S, num_heads * head_dim).astype(x.dtype))


if __name__ == "__main__":
    key = jax.random.PRNGKey(0)
    batch, seq, hidden = 2, 128, 128
    num_heads, head_dim = 2, 128
    rope_dim_per_head = head_dim
    max_position_embeddings = 256
    N = num_heads * head_dim

    k0, k1, k2, k3, k4, k5, k6 = jax.random.split(key, 7)
    wscale = 1.0 / math.sqrt(hidden)
    params = {
        "wq": jax.random.normal(k0, (hidden, N), jnp.float32) * wscale,
        "wk": jax.random.normal(k1, (hidden, N), jnp.float32) * wscale,
        "wv": jax.random.normal(k2, (hidden, N), jnp.float32) * wscale,
        "bq": jax.random.normal(k3, (N,), jnp.float32) * 0.02,
        "bk": jax.random.normal(k4, (N,), jnp.float32) * 0.02,
        "bv": jax.random.normal(k5, (N,), jnp.float32) * 0.02,
    }
    x = jax.random.normal(k6, (batch, seq, hidden), jnp.float32)

    out, _ = nsa_attention_forward(x, params, num_heads, head_dim,
                                   rope_dim_per_head, max_position_embeddings)
    out = jax.block_until_ready(out)

    ref = nsa_attention_ref(x, params, num_heads, head_dim,
                            rope_dim_per_head, max_position_embeddings)
    assert out.shape == ref.shape and out.dtype == x.dtype
    err = jnp.max(jnp.abs(out.astype(jnp.float32) - ref.astype(jnp.float32)))
    assert float(err) < 2e-2, f"max abs err {err}"

    print("KERNEL_OK")
</pallas_src>

<mosaic_0001>
module attributes {stable_mosaic.version = 11 : i64} {
  func.func @_linear_kernel(%arg0: i32, %arg1: i32, %arg2: i32, %arg3: memref<256x128xf32, #tpu.memory_space<vmem>>, %arg4: memref<128x256xf32, #tpu.memory_space<vmem>>, %arg5: memref<1x256xf32, #tpu.memory_space<vmem>>, %arg6: memref<256x256xf32, #tpu.memory_space<vmem>>, %arg7: memref<256x256xf32, #tpu.memory_space<vmem>>) attributes {dimension_semantics = [#tpu.dimension_semantics<parallel>, #tpu.dimension_semantics<parallel>, #tpu.dimension_semantics<arbitrary>], iteration_bounds = array<i64: 1, 3, 1>, scalar_prefetch = 0 : i64, scratch_operands = 1 : i64, tpu.core_type = #tpu.core_type<tc>, window_params = [{transform_indices = @transform_0, window_bounds = array<i64: 256, 128>}, {transform_indices = @transform_1, window_bounds = array<i64: 128, 256>}, {transform_indices = @transform_2, window_bounds = array<i64: 1, 256>}, {transform_indices = @transform_3, window_bounds = array<i64: 256, 256>}]} {
    %c0_i32 = arith.constant 0 : i32
    %0 = arith.cmpi eq, %arg2, %c0_i32 : i32
    %1 = arith.extui %0 : i1 to i32
    %c0_i32_0 = arith.constant 0 : i32
    %2 = arith.cmpi ne, %1, %c0_i32_0 : i32
    scf.if %2 {
      %cst_10 = arith.constant 0.000000e+00 : f32
      %12 = vector.broadcast %cst_10 : f32 to vector<256x256xf32>
      %c0_11 = arith.constant 0 : index
      %c0_12 = arith.constant 0 : index
      %13 = vector.load %arg7[%c0_11, %c0_12] : memref<256x256xf32, #tpu.memory_space<vmem>>, vector<256x256xf32>
      tpu.vector_store %arg7[%c0_11, %c0_12], %12 {strides = array<i32>} : memref<256x256xf32, #tpu.memory_space<vmem>>, vector<256x256xf32>,
    } else {
    }
    %c0 = arith.constant 0 : index
    %c0_1 = arith.constant 0 : index
    %3 = vector.load %arg7[%c0, %c0_1] : memref<256x256xf32, #tpu.memory_space<vmem>>, vector<256x256xf32>
    %c0_2 = arith.constant 0 : index
    %c0_3 = arith.constant 0 : index
    %4 = vector.load %arg3[%c0_2, %c0_3] : memref<256x128xf32, #tpu.memory_space<vmem>>, vector<256x128xf32>
    %c0_4 = arith.constant 0 : index
    %c0_5 = arith.constant 0 : index
    %5 = vector.load %arg4[%c0_4, %c0_5] : memref<128x256xf32, #tpu.memory_space<vmem>>, vector<128x256xf32>
    %cst = arith.constant dense<0.000000e+00> : vector<256x256xf32>
    %6 = tpu.matmul %4, %5, %cst {dimension_numbers = #tpu.dot_dimension_numbers<[1], [0], [0], [1], [0, 0, 1, 1], [], []>} : vector<256x128xf32>, vector<128x256xf32>, vector<256x256xf32> -> vector<256x256xf32>
    %7 = arith.addf %3, %6 : vector<256x256xf32>
    %c0_6 = arith.constant 0 : index
    %c0_7 = arith.constant 0 : index
    %8 = vector.load %arg7[%c0_6, %c0_7] : memref<256x256xf32, #tpu.memory_space<vmem>>, vector<256x256xf32>
    tpu.vector_store %arg7[%c0_6, %c0_7], %7 {strides = array<i32>} : memref<256x256xf32, #tpu.memory_space<vmem>>, vector<256x256xf32>,
    %c0_i32_8 = arith.constant 0 : i32
    %9 = arith.cmpi eq, %arg2, %c0_i32_8 : i32
    %10 = arith.extui %9 : i1 to i32
    %c0_i32_9 = arith.constant 0 : i32
    %11 = arith.cmpi ne, %10, %c0_i32_9 : i32
    scf.if %11 {
      %c0_10 = arith.constant 0 : index
      %c0_11 = arith.constant 0 : index
      %12 = vector.load %arg7[%c0_10, %c0_11] : memref<256x256xf32, #tpu.memory_space<vmem>>, vector<256x256xf32>
      %c0_12 = arith.constant 0 : index
      %c0_13 = arith.constant 0 : index
      %13 = vector.load %arg5[%c0_12, %c0_13] : memref<1x256xf32, #tpu.memory_space<vmem>>, vector<1x256xf32>
      %14 = vector.broadcast %13 : vector<1x256xf32> to vector<256x256xf32>
      %15 = arith.addf %12, %14 : vector<256x256xf32>
      %c0_14 = arith.constant 0 : index
      %c0_15 = arith.constant 0 : index
      %16 = vector.load %arg6[%c0_14, %c0_15] : memref<256x256xf32, #tpu.memory_space<vmem>>, vector<256x256xf32>
      tpu.vector_store %arg6[%c0_14, %c0_15], %15 {strides = array<i32>} : memref<256x256xf32, #tpu.memory_space<vmem>>, vector<256x256xf32>,
    } else {
    }
    return
  }
  func.func @transform_0(%arg0: i32, %arg1: i32, %arg2: i32) -> (i32, i32) {
    %c0_i32 = arith.constant 0 : i32
    return %arg0, %arg2 : i32, i32
  }
  func.func @transform_1(%arg0: i32, %arg1: i32, %arg2: i32) -> (i32, i32) {
    %c0_i32 = arith.constant 0 : i32
    return %arg2, %arg1 : i32, i32
  }
  func.func @transform_2(%arg0: i32, %arg1: i32, %arg2: i32) -> (i32, i32) {
    %c0_i32 = arith.constant 0 : i32
    %c0_i32_0 = arith.constant 0 : i32
    return %c0_i32, %arg1 : i32, i32
  }
  func.func @transform_3(%arg0: i32, %arg1: i32, %arg2: i32) -> (i32, i32) {
    %c0_i32 = arith.constant 0 : i32
    return %arg0, %arg1 : i32, i32
  }
}

</mosaic_0001>

<bundles_post_ra>
// kernel: tpu_custom_call.1
= control target key start
LH: loop header
LB: loop body
LE: loop exit
PB: predicated region body
PF: predicated region fallthrough
CT: control target
= control target key end

     0   :  { %8 = vsyncpa [#allocation4], 0  ;;  %s1930_s0 = inlined_call_operand.hbm [shape: f32[256,128], index: 0, kind: input, shape index: {}]   ;;  %s1931_s1 = inlined_call_operand.hbm [shape: f32[128,768], index: 1, kind: input, shape index: {}]   ;;  %s1932_s2 = inlined_call_operand.vmem [shape: f32[1,768], index: 2, kind: input, shape index: {}]   ;;  %s1933_s3 = inlined_call_operand.hbm [shape: f32[256,768], index: 3, kind: output, shape index: {}]  }
   0x1   :  { %9 = vsyncpa [#allocation7], 0 }
   0x2   :  { %11 = vsyncpa [#allocation7 + $0x1], 0 }
   0x3   :  { %12 = vsyncpa [#allocation5], 0 }
   0x4   :  { %14 = vsyncpa [#allocation5 + $0x1], 0  ;;  %s1513_s12 = smov 0   ;;  %s1515_s13 = smov 0  }
   0x5   :  { %s1517_s14 = smov 0   ;;  %s1519_s15 = smov 0  }
   0x6   :  { %s1521_s16 = smov 0   ;;  %s1523_s17 = smov 0  }
   0x7 LB: > { %s1185_s18 = sadd.s32 4294967295, %s1479_s17   ;;  %s1186_s19 = sadd.s32 4294967294, %s1479_s17   ;;  %s1479_s17 = sphi %s1523_s17, %s20_s17   ;;  %s1475_s16 = sphi %s1521_s16, %s1958_s16   ;;  %s1471_s15 = sphi %s1519_s15, %s1957_s15   ;;  %s1467_s14 = sphi %s1517_s14, %s1956_s14   ;;  %s1463_s13 = sphi %s1515_s13, %s1955_s13   ;;  %s1459_s12 = sphi %s1513_s12, %s1954_s12  }
   0x8   : > { %p83_p0 = scmp.ne.s32.totalorder %s1467_s14, %s1463_s13  ;;  %p84_p1 = scmp.eq.s32.totalorder %s1479_s17, 0 }
   0x9   : > { %p89_p2 = scmp.ne.s32.totalorder %s1463_s13, %s1459_s12  ;;  %p1550_p3 = scmp.eq.s32.totalorder %s1185_s18, 0 }
   0xa   : > { %p1554_p4 = por %p84_p1, %p83_p0  ;;  %p141_p5 = scmp.eq.s32.totalorder %s1185_s18, 2 }
   0xb   : > { %s1940_s20 = scalar_select %p1550_p3, 1, 0 }
   0xc   : > { %p1560_p6 = por %p1550_p3, %p89_p2  ;;  %p147_p7 = scmp.eq.s32.totalorder %s1186_s19, 2 }
   0xd   : > { %p1564_p8 = por %p141_p5, %p83_p0  ;;  %p1187_p9 = scmp.ge.s32.totalorder %s1479_s17, 1 }
   0xe   : > { %s1942_s22 = scalar_select %p1560_p6, 1, 0 }
   0xf   : > { %s1943_s23 = scalar_select %p1564_p8, 1, 0 }
  0x10   : > { %p1569_p10 = por %p147_p7, %p89_p2  ;;  %p154_p11 = scmp.lt.s32.totalorder %s1479_s17, 4 }
  0x11   : > { %s1481_s26 = smov [#allocation3]   ;;  %p1274_p0 = scmp.lt.s32.totalorder %s1479_s17, 3 }
  0x12   : > { %s1944_s24 = scalar_select %p1569_p10, 1, 0 }
  0x13   : > { %p1574_p12 = pnand %p1187_p9, %p154_p11  ;;  %s170_s27 = sshll.u32 %s1481_s26, 4  ;;  %s171_s27 = int_to_ptr.vmem [resolvable:$true] %s170_s27 }
  0x14   : > { %p1589_p2 = pnand %p1274_p0, %p1554_p4  ;;  %s35_s30 = sadd.s32 1, %s1475_s16 }
  0x15   : > { %s1945_s25 = scalar_select %p1574_p12, 1, 0 }
  0x16   : > { %p1261_p13 = pneg %p1574_p12  ;;  %s1335_s6 = scalar_lea.hbm %s1930_s0, 4096 }
  0x17   : > { %s1947_s29 = scalar_select %p1589_p2, 1, 0 }
  0x18   : > { %p1583_p1 = pnand %p1261_p13, %p1550_p3  ;;  %p1336_p5 = scmp.ne.s32.totalorder %s1930_s0, %s1335_s6 }
  0x19   : > { %p1342_p4 = scmp.lt.u32.totalorder %s1335_s6, %s1930_s0 }
  0x1a   : > { %p1337_p7 = pneg %p1583_p1 }
  0x1c   : > { %p1338_p9 = pnand %p1337_p7, %p1336_p5 }
  0x1e   : > { %p1339_p11 = pneg %p1338_p9 }
  0x20   : > { %p1344_p13 = pnand %p1342_p4, %p1339_p11 }
  0x22   : > { %1347 = shalt.err (!%p1344_p13)
}
  0x23   : > { %s1348_s11 = scalar_lea.vmem %s171_s27, 4096  ;;  %p1356_p6 = scmp.lt.s32.totalorder %s171_s27, %s171_s27 }
  0x24   : > { %p1349_p0 = scmp.ne.s32.totalorder %s171_s27, %s1348_s11  ;;  %p1357_p3 = scmp.lt.s32.totalorder %s1348_s11, %s1348_s11 }
  0x26   : > { %p1351_p10 = pnand %p1349_p0, %p1337_p7  ;;  %p1358_p12 = por %p1357_p3, %p1356_p6 }
  0x28   : > { %p1352_p8 = pneg %p1351_p10 }
  0x2a   : > { %p1359_p2 = pnand %p1358_p12, %p1352_p8 }
  0x2c   : > { %1362 = shalt.err (!%p1359_p2)
}
  0x2d   : > { %s1482_s18 = smov 128   ;;  %s1483_s19 = smov 8  }
  0x2e   : > { %1264 = dma.hbm_to_vmem [thread:$0]  (!%p1583_p1), %s1930_s0, 4096, %s171_s27, [#allocation4], %s1482_s18, %s1482_s18, %s1483_s19  }
  0x2f   : > { %p37_p5 = scmp.ge.s32.totalorder %s35_s30, 3  ;;  %s76_s4 = sadd.s32 1, %s1467_s14 }
  0x30   : > { %s184_s5 = sand.u32 1, %s1467_s14   ;;  %s1203_s8 = sshll.u32 %s1475_s16, 8 }
  0x31   : > { %s1960_s30 = smov (%p37_p5, %s35_s30), 0  ;;  %s1190_s6 = sshll.u32 %s184_s5, 8 }
  0x32   : > { %s72_s7 = ssub.s32 %s1475_s16, %s1960_s30  ;;  %s1620_s28 = scalar_lea.hbm %s1931_s1, %s1203_s8 }
  0x33   : > { %p74_p3 = scmp.eq.s32.totalorder %s72_s7, 0  ;;  %s188_s27 = scalar_lea.vmem [#allocation6], %s1190_s6 }
  0x34   : > { %s198_s11 = sshll.u32 %s188_s27, 4  ;;  %s1627_s19 = scalar_lea.sflag [#allocation7], %s184_s5  ;;  %s1625_s11 = int_to_ptr.vmem [resolvable:$true] %s198_s11 }
  0x35   : > { %s1623_s18 = scalar_select %p74_p3, %s1467_s14, %s76_s4  }
  0x36   : > { %s1363_s21 = scalar_lea.hbm %s1620_s28, 4096  ;;  %p1948_p8 = scmp.ne.s32.totalorder %s1947_s29, 0 }
  0x37   : > { %p1364_p6 = scmp.ne.s32.totalorder %s1620_s28, %s1363_s21  ;;  %s1368_s8 = scalar_lea.hbm %s1931_s1, 12288 }
  0x38   : > { %p1365_p10 = pneg %p1948_p8  ;;  %p1369_p2 = scmp.lt.u32.totalorder %s1620_s28, %s1931_s1 }
  0x39   : > { %p1370_p7 = scmp.lt.u32.totalorder %s1368_s8, %s1363_s21  ;;  %p1372_p11 = scmp.lt.u32.totalorder %s1363_s21, %s1620_s28 }
  0x3a   : > { %p1366_p12 = pnand %p1365_p10, %p1364_p6 }
  0x3b   : > { %p1371_p9 = por %p1370_p7, %p1369_p2 }
  0x3c   : > { %p1367_p1 = pneg %p1366_p12 }
  0x3d   : > { %p1373_p4 = por %p1372_p11, %p1371_p9 }
  0x3f   : > { %p1374_p13 = pnand %p1373_p4, %p1367_p1 }
  0x41   : > { %1377 = shalt.err (!%p1374_p13)
}
  0x42   : > { %s1378_s4 = scalar_lea.vmem %s1625_s11, 4096  ;;  %s1484_s5 = smov [#allocation6]  }
  0x43   : > { %p1379_p0 = scmp.ne.s32.totalorder %s1625_s11, %s1378_s4  ;;  %s1383_s10 = sshll.u32 %s1484_s5, 4  ;;  %s1384_s10 = int_to_ptr.vmem [resolvable:$false] %s1383_s10 }
  0x44   : > { %s1385_s27 = scalar_lea.vmem %s1384_s10, 8192  ;;  %p1386_p6 = scmp.lt.s32.totalorder %s1625_s11, %s1384_s10 }
  0x45   : > { %p1381_p5 = pnand %p1379_p0, %p1365_p10  ;;  %p1387_p12 = scmp.lt.s32.totalorder %s1385_s27, %s1378_s4 }
  0x47   : > { %p1382_p3 = pneg %p1381_p5  ;;  %p1388_p2 = por %p1387_p12, %p1386_p6 }
  0x49   : > { %p1389_p7 = pnand %p1388_p2, %p1382_p3 }
  0x4b   : > { %1392 = shalt.err (!%p1389_p7)
}
  0x4c   : > { %s1485_s21 = smov 768   ;;  %s1486_s26 = smov 256  }
  0x4d   : > { %s1487_s7 = smov 16   ;;  %p1949_p10 = scmp.ne.s32.totalorder %s1945_s25, 0 }
  0x4e   : > { %1268 = dma.hbm_to_vmem [thread:$0]  (!%p1948_p8), %s1620_s28, 4096, %s1625_s11, %s1627_s19, %s1485_s21, %s1486_s26, %s1487_s7  }
  0x4f   : > { %218 = sbr.rel (%p1949_p10) target bundleno = 417 (0x1a1), region = 32  ;;  %p1950_p1 = scmp.ne.s32.totalorder (!%p1949_p10), %s1940_s20, 0 }
  0x56   : > { %1446 = dma.done.wait (%p1950_p1), [#allocation4], 4096  }
  0x57   : > { %1448 = vsyncadd (%p1950_p1), [#allocation4], 4294963200  ;;  %s1662_s8 = sand.u32 1, %s1463_s13   ;;  %p1951_p8 = scmp.ne.s32.totalorder %s1942_s22, 0 }
  0x58   : > { %s1195_s6 = sshll.u32 %s1662_s8, 8  ;;  %s225_s9 = scalar_lea.sflag [#allocation7], %s1662_s8 }
  0x59   : > { %s1666_s4 = scalar_lea.vmem [#allocation6], %s1195_s6 }
  0x5a   : > { %1450 = dma.done.wait (%p1951_p8), %s225_s9, 4096  }
  0x5b   : > { %1452 = vsyncadd (%p1951_p8), %s225_s9, 4294963200  ;;  %v1488_v0 = vmov 0.0   ;;  %v430_v1 = vld [vmem:[%s1666_s4 + $0x8] sm:$0xff]  ;;  %v432_v2 = vld [vmem:[%s1666_s4 + $0x18] sm:$0xff]  ;;  %s1197_s20 = sshll.u32 %s1471_s15, 1  ;;  %s1196_s28 = sshll.u32 %s1662_s8, 9 }
  0x5c   : > { %525 = vmatprep.mubr.f32.mxu0 %v1488_v0  ;;  %621 = vmatprep.mubr.f32.mxu1 %v1488_v0  ;;  %v429_v3 = vld [vmem:[%s1666_s4] sm:$0xff]  ;;  %v1205_v4 = vpack.c.bf16 %v432_v2, %v430_v1  ;;  %v431_v5 = vld [vmem:[%s1666_s4 + $0x10] sm:$0xff]  ;;  %v434_v6 = vld [vmem:[%s1666_s4 + $0x28] sm:$0xff]  ;;  %p259_p9 = scmp.lt.s32.totalorder %s1197_s20, 5  ;;  %s1749_s11 = scalar_lea.vmem [#allocation8], %s1196_s28 }
  0x5d   : > { %v436_v7 = vld [vmem:[%s1666_s4 + $0x38] sm:$0xff]  ;;  %v1207_v8 = vpack.c.bf16 %v431_v5, %v429_v3  ;;  %v433_v10 = vld [vmem:[%s1666_s4 + $0x20] sm:$0xff]  ;;  %v435_v11 = vld [vmem:[%s1666_s4 + $0x30] sm:$0xff]  ;;  %s1204_s19 = sshll.u32 %s1471_s15, 8  ;;  %s1070_s5 = sshll.u32 %s1749_s11, 4  ;;  %s1876_s5 = int_to_ptr.vmem [resolvable:$true] %s1070_s5 }
  0x5e   : > { %v1209_v9 = vpack.c.bf16 %v436_v7, %v434_v6  ;;  %v438_v12 = vld [vmem:[%s1666_s4 + $0x48] sm:$0xff]  ;;  %1206 = vmatprep.subr.bf16.mxu0 %v1205_v4  ;;  %1237 = vmatprep.subr.bf16.mxu1 %v1205_v4  ;;  %v440_v13 = vld [vmem:[%s1666_s4 + $0x58] sm:$0xff]  ;;  %v1211_v14 = vpack.c.bf16 %v435_v11, %v433_v10  ;;  %v437_v16 = vld [vmem:[%s1666_s4 + $0x40] sm:$0xff]  ;;  %s1962_s20 = smov (!%p259_p9, %s1197_s20), 5  ;;  %s1872_s15 = scalar_lea.hbm %s1933_s3, %s1204_s19 }
  0x5f   : > { %1208 = vmatpush1.bf16.msra.mxu0 %v1207_v8  ;;  %1245 = vmatpush1.bf16.msra.mxu1 %v1207_v8  ;;  %v1213_v15 = vpack.c.bf16 %v440_v13, %v438_v12  ;;  %v439_v17 = vld [vmem:[%s1666_s4 + $0x50] sm:$0xff]  ;;  %v442_v18 = vld [vmem:[%s1666_s4 + $0x68] sm:$0xff]  ;;  %v444_v19 = vld [vmem:[%s1666_s4 + $0x78] sm:$0xff]  ;;  %s261_s29 = scalar_lea.vmem %s1932_s2, %s1962_s20  ;;  %s1054_s21 = scalar_lea.sflag [#allocation5], %s1662_s8 }
  0x60   : > { %1210 = vmatprep.subr.bf16.mxu0 %v1209_v9  ;;  %1238 = vmatprep.subr.bf16.mxu1 %v1209_v9  ;;  %v1215_v20 = vpack.c.bf16 %v439_v17, %v437_v16  ;;  %v1217_v21 = vpack.c.bf16 %v444_v19, %v442_v18  ;;  %v441_v22 = vld [vmem:[%s1666_s4 + $0x60] sm:$0xff]  ;;  %v443_v23 = vld [vmem:[%s1666_s4 + $0x70] sm:$0xff]  ;;  %v446_v24 = vld [vmem:[%s1666_s4 + $0x88] sm:$0xff]  ;;  %v915_v18 = vlaneseq  ;;  %s1393_s26 = scalar_lea.vmem %s1876_s5, 8192  ;;  %p1952_p4 = scmp.ne.s32.totalorder %s1943_s23, 0 }
  0x61   : > { %v448_v25 = vld [vmem:[%s1666_s4 + $0x98] sm:$0xff]  ;;  %v1219_v26 = vpack.c.bf16 %v443_v23, %v441_v22  ;;  %v445_v28 = vld [vmem:[%s1666_s4 + $0x80] sm:$0xff]  ;;  %v447_v29 = vld [vmem:[%s1666_s4 + $0x90] sm:$0xff]  ;;  %p1394_p11 = scmp.ne.s32.totalorder %s1876_s5, %s1393_s26  ;;  %s1489_s7 = smov [#allocation8]  }
  0x62   : > { %v1221_v27 = vpack.c.bf16 %v448_v25, %v446_v24  ;;  %v450_v30 = vld [vmem:[%s1666_s4 + $0xa8] sm:$0xff]  ;;  %v452_v31 = vld [vmem:[%s1666_s4 + $0xb8] sm:$0xff]  ;;  %v1223_v32 = vpack.c.bf16 %v447_v29, %v445_v28  ;;  %v449_v34 = vld [vmem:[%s1666_s4 + $0xa0] sm:$0xff]  ;;  %v916_v19 = vshrl.u32 %v915_v18, 7  ;;  %s1397_s6 = sshll.u32 %s1489_s7, 4  ;;  %s1398_s6 = int_to_ptr.vmem [resolvable:$false] %s1397_s6 }
  0x63   : > { %1212 = vmatpush1.bf16.msra.mxu0 %v1211_v14  ;;  %1246 = vmatpush1.bf16.msra.mxu1 %v1211_v14  ;;  %v1225_v33 = vpack.c.bf16 %v452_v31, %v450_v30  ;;  %v451_v35 = vld [vmem:[%s1666_s4 + $0xb0] sm:$0xff]  ;;  %v454_v36 = vld [vmem:[%s1666_s4 + $0xc8] sm:$0xff]  ;;  %v456_v37 = vld [vmem:[%s1666_s4 + $0xd8] sm:$0xff]  ;;  %p1395_p13 = pnand %p1394_p11, %p1952_p4  ;;  %s1399_s9 = scalar_lea.vmem %s1398_s6, 16384 }
  0x64   : > { %1214 = vmatprep.subr.bf16.mxu0 %v1213_v15  ;;  %1239 = vmatprep.subr.bf16.mxu1 %v1213_v15  ;;  %v1227_v38 = vpack.c.bf16 %v451_v35, %v449_v34  ;;  %v1229_v39 = vpack.c.bf16 %v456_v37, %v454_v36  ;;  %v453_v40 = vld [vmem:[%s1666_s4 + $0xc0] sm:$0xff]  ;;  %v455_v41 = vld [vmem:[%s1666_s4 + $0xd0] sm:$0xff]  ;;  %v458_v42 = vld [vmem:[%s1666_s4 + $0xe8] sm:$0xff]  ;;  %v921_v22 = vsub.s32 1, %v916_v19  ;;  %p1400_p5 = scmp.lt.s32.totalorder %s1876_s5, %s1398_s6  ;;  %p1401_p3 = scmp.lt.s32.totalorder %s1399_s9, %s1393_s26 }
  0x65   : > { %v460_v43 = vld [vmem:[%s1666_s4 + $0xf8] sm:$0xff]  ;;  %v1231_v44 = vpack.c.bf16 %v455_v41, %v453_v40  ;;  %v457_v46 = vld [vmem:[%s1666_s4 + $0xe0] sm:$0xff]  ;;  %v459_v47 = vld [vmem:[%s1666_s4 + $0xf0] sm:$0xff]  ;;  %p1396_p0 = pneg %p1395_p13 }
  0x66   : > { %v1233_v45 = vpack.c.bf16 %v460_v43, %v458_v42  ;;  %v1235_v48 = vpack.c.bf16 %v459_v47, %v457_v46  ;;  %v397_v49 = vld [vmem:[#allocation3] sm:$0xff]  ;;  %v398_v51 = vld [vmem:[#allocation3 + $0x8] sm:$0xff]  ;;  %v399_v53 = vld [vmem:[#allocation3 + $0x10] sm:$0xff]  ;;  %p1402_p6 = por %p1401_p3, %p1400_p5 }
  0x67   : > { %1216 = vmatpush1.bf16.msra.mxu0 %v1215_v20  ;;  %1247 = vmatpush1.bf16.msra.mxu1 %v1215_v20  ;;  %v413_v50 = vld [vmem:[#allocation3 + $0x80] sm:$0xff]  ;;  %v414_v52 = vld [vmem:[#allocation3 + $0x88] sm:$0xff]  ;;  %v415_v54 = vld [vmem:[#allocation3 + $0x90] sm:$0xff]  ;;  %v917_v20 = vsub.s32 0, %v916_v19 }
  0x68   : > { %1218 = vmatprep.subr.bf16.mxu0 %v1217_v21  ;;  %1240 = vmatprep.subr.bf16.mxu1 %v1217_v21  ;;  %v400_v55 = vld [vmem:[#allocation3 + $0x18] sm:$0xff]  ;;  %v401_v57 = vld [vmem:[#allocation3 + $0x20] sm:$0xff]  ;;  %v402_v59 = vld [vmem:[#allocation3 + $0x28] sm:$0xff]  ;;  %p1403_p12 = pnand %p1402_p6, %p1396_p0 }
  0x69   : > { %v416_v56 = vld [vmem:[#allocation3 + $0x98] sm:$0xff]  ;;  %v417_v58 = vld [vmem:[#allocation3 + $0xa0] sm:$0xff]  ;;  %v418_v60 = vld [vmem:[#allocation3 + $0xa8] sm:$0xff] }
  0x6a   : > { %v403_v61 = vld [vmem:[#allocation3 + $0x30] sm:$0xff]  ;;  %v404_v63 = vld [vmem:[#allocation3 + $0x38] sm:$0xff]  ;;  %v405_v2 = vld [vmem:[#allocation3 + $0x40] sm:$0xff] }
  0x6b   : > { %1220 = vmatpush1.bf16.msra.mxu0 %v1219_v26  ;;  %1248 = vmatpush1.bf16.msra.mxu1 %v1219_v26  ;;  %v419_v62 = vld [vmem:[#allocation3 + $0xb0] sm:$0xff]  ;;  %v420_v1 = vld [vmem:[#allocation3 + $0xb8] sm:$0xff]  ;;  %v421_v3 = vld [vmem:[#allocation3 + $0xc0] sm:$0xff] }
  0x6c   : > { %1222 = vmatprep.subr.bf16.mxu0 %v1221_v27  ;;  %1241 = vmatprep.subr.bf16.mxu1 %v1221_v27  ;;  %v406_v4 = vld [vmem:[#allocation3 + $0x48] sm:$0xff]  ;;  %v407_v6 = vld [vmem:[#allocation3 + $0x50] sm:$0xff]  ;;  %v408_v8 = vld [vmem:[#allocation3 + $0x58] sm:$0xff] }
  0x6d   : > { %v422_v5 = vld [vmem:[#allocation3 + $0xc8] sm:$0xff]  ;;  %v423_v7 = vld [vmem:[#allocation3 + $0xd0] sm:$0xff]  ;;  %v424_v9 = vld [vmem:[#allocation3 + $0xd8] sm:$0xff] }
  0x6e   : > { %v409_v10 = vld [vmem:[#allocation3 + $0x60] sm:$0xff]  ;;  %v410_v12 = vld [vmem:[#allocation3 + $0x68] sm:$0xff]  ;;  %v411_v14 = vld [vmem:[#allocation3 + $0x70] sm:$0xff] }
  0x6f   : > { %1224 = vmatpush1.bf16.msra.mxu0 %v1223_v32  ;;  %1249 = vmatpush1.bf16.msra.mxu1 %v1223_v32  ;;  %v425_v11 = vld [vmem:[#allocation3 + $0xe0] sm:$0xff]  ;;  %v426_v13 = vld [vmem:[#allocation3 + $0xe8] sm:$0xff]  ;;  %v427_v15 = vld [vmem:[#allocation3 + $0xf0] sm:$0xff] }
  0x70   : > { %1226 = vmatprep.subr.bf16.mxu0 %v1225_v33  ;;  %1242 = vmatprep.subr.bf16.mxu1 %v1225_v33  ;;  %v412_v16 = vld [vmem:[#allocation3 + $0x78] sm:$0xff]  ;;  %v913_v21 = vld [vmem:[%s261_s29] sm:$0x3] }
  0x71   : > { %v428_v17 = vld [vmem:[#allocation3 + $0xf8] sm:$0xff]  ;;  %v1741_v23 = vrot.slane %v913_v21, %v917_v20 }
  0x73   : > { %1228 = vmatpush1.bf16.msra.mxu0 %v1227_v38  ;;  %1250 = vmatpush1.bf16.msra.mxu1 %v1227_v38 }
  0x74   : > { %1230 = vmatprep.subr.bf16.mxu0 %v1229_v39  ;;  %1243 = vmatprep.subr.bf16.mxu1 %v1229_v39 }
  0x77   : > { %1232 = vmatpush1.bf16.msra.mxu0 %v1231_v44  ;;  %1251 = vmatpush1.bf16.msra.mxu1 %v1231_v44 }
  0x78   : > { %1234 = vmatprep.subr.bf16.mxu0 %v1233_v45  ;;  %1244 = vmatprep.subr.bf16.mxu1 %v1233_v45 }
  0x7b   : > { %1236 = vmatpush1.bf16.msra.mxu0 %v1235_v48  ;;  %1252 = vmatpush1.bf16.msra.mxu1 %v1235_v48 }
  0x7e   : > { %526 = vmatmul.mubr.f32.vlgmr.msra.gmra.mrb[0].mxu0 %v397_v49  ;;  %622 = vmatmul.mubr.f32.vlgmr.msra.gmra.mrb[0].mxu1 %v413_v50 }
  0x7f   : > { %531 = vmatprep.mubr.f32.mxu0 %v1488_v0  ;;  %627 = vmatprep.mubr.f32.mxu1 %v1488_v0 }
  0x82   : > { %532 = vmatmul.mubr.f32.gmra.mrb[2].mxu0 %v398_v51  ;;  %628 = vmatmul.mubr.f32.gmra.mrb[2].mxu1 %v414_v52 }
  0x83   : > { %537 = vmatprep.mubr.f32.mxu0 %v1488_v0  ;;  %633 = vmatprep.mubr.f32.mxu1 %v1488_v0 }
  0x86   : > { %538 = vmatmul.mubr.f32.gmra.mrb[4].mxu0 %v399_v53  ;;  %634 = vmatmul.mubr.f32.gmra.mrb[4].mxu1 %v415_v54 }
  0x87   : > { %543 = vmatprep.mubr.f32.mxu0 %v1488_v0  ;;  %639 = vmatprep.mubr.f32.mxu1 %v1488_v0 }
  0x8a   : > { %544 = vmatmul.mubr.f32.gmra.mrb[6].mxu0 %v400_v55  ;;  %640 = vmatmul.mubr.f32.gmra.mrb[6].mxu1 %v416_v56 }
  0x8b   : > { %549 = vmatprep.mubr.f32.mxu0 %v1488_v0  ;;  %645 = vmatprep.mubr.f32.mxu1 %v1488_v0 }
  0x8e   : > { %550 = vmatmul.mubr.f32.gmra.mrb[8].mxu0 %v401_v57  ;;  %646 = vmatmul.mubr.f32.gmra.mrb[8].mxu1 %v417_v58 }
  0x8f   : > { %555 = vmatprep.mubr.f32.mxu0 %v1488_v0  ;;  %651 = vmatprep.mubr.f32.mxu1 %v1488_v0 }
  0x92   : > { %556 = vmatmul.mubr.f32.gmra.mrb[10].mxu0 %v402_v59  ;;  %652 = vmatmul.mubr.f32.gmra.mrb[10].mxu1 %v418_v60 }
  0x93   : > { %561 = vmatprep.mubr.f32.mxu0 %v1488_v0  ;;  %657 = vmatprep.mubr.f32.mxu1 %v1488_v0 }
  0x96   : > { %562 = vmatmul.mubr.f32.gmra.mrb[12].mxu0 %v403_v61  ;;  %658 = vmatmul.mubr.f32.gmra.mrb[12].mxu1 %v419_v62 }
  0x97   : > { %567 = vmatprep.mubr.f32.mxu0 %v1488_v0  ;;  %663 = vmatprep.mubr.f32.mxu1 %v1488_v0 }
  0x9a   : > { %568 = vmatmul.mubr.f32.gmra.mrb[14].mxu0 %v404_v63  ;;  %664 = vmatmul.mubr.f32.gmra.mrb[14].mxu1 %v420_v1 }
  0x9b   : > { %573 = vmatprep.mubr.f32.mxu0 %v1488_v0  ;;  %669 = vmatprep.mubr.f32.mxu1 %v1488_v0 }
  0x9e   : > { %574 = vmatmul.mubr.f32.gmra.mrb[16].mxu0 %v405_v2  ;;  %670 = vmatmul.mubr.f32.gmra.mrb[16].mxu1 %v421_v3 }
  0x9f   : > { %579 = vmatprep.mubr.f32.mxu0 %v1488_v0  ;;  %675 = vmatprep.mubr.f32.mxu1 %v1488_v0 }
  0xa2   : > { %580 = vmatmul.mubr.f32.gmra.mrb[18].mxu0 %v406_v4  ;;  %676 = vmatmul.mubr.f32.gmra.mrb[18].mxu1 %v422_v5 }
  0xa3   : > { %585 = vmatprep.mubr.f32.mxu0 %v1488_v0  ;;  %681 = vmatprep.mubr.f32.mxu1 %v1488_v0 }
  0xa6   : > { %586 = vmatmul.mubr.f32.gmra.mrb[20].mxu0 %v407_v6  ;;  %682 = vmatmul.mubr.f32.gmra.mrb[20].mxu1 %v423_v7 }
  0xa7   : > { %591 = vmatprep.mubr.f32.mxu0 %v1488_v0  ;;  %687 = vmatprep.mubr.f32.mxu1 %v1488_v0 }
  0xaa   : > { %592 = vmatmul.mubr.f32.gmra.mrb[22].mxu0 %v408_v8  ;;  %688 = vmatmul.mubr.f32.gmra.mrb[22].mxu1 %v424_v9 }
  0xab   : > { %597 = vmatprep.mubr.f32.mxu0 %v1488_v0  ;;  %693 = vmatprep.mubr.f32.mxu1 %v1488_v0 }
  0xae   : > { %598 = vmatmul.mubr.f32.gmra.mrb[24].mxu0 %v409_v10  ;;  %694 = vmatmul.mubr.f32.gmra.mrb[24].mxu1 %v425_v11 }
  0xaf   : > { %603 = vmatprep.mubr.f32.mxu0 %v1488_v0  ;;  %699 = vmatprep.mubr.f32.mxu1 %v1488_v0 }
  0xb2   : > { %604 = vmatmul.mubr.f32.gmra.mrb[26].mxu0 %v410_v12  ;;  %700 = vmatmul.mubr.f32.gmra.mrb[26].mxu1 %v426_v13 }
  0xb3   : > { %609 = vmatprep.mubr.f32.mxu0 %v1488_v0  ;;  %705 = vmatprep.mubr.f32.mxu1 %v1488_v0 }
  0xb6   : > { %610 = vmatmul.mubr.f32.gmra.mrb[28].mxu0 %v411_v14  ;;  %706 = vmatmul.mubr.f32.gmra.mrb[28].mxu1 %v427_v15 }
  0xb7   : > { %615 = vmatprep.mubr.f32.mxu0 %v1488_v0  ;;  %711 = vmatprep.mubr.f32.mxu1 %v1488_v0  ;;  %v1743_v0 = vrot.slane %v913_v21, %v921_v22 }
  0xba   : > { %616 = vmatmul.mubr.f32.gmra.mrb[30].mxu0 %v412_v16  ;;  %712 = vmatmul.mubr.f32.gmra.mrb[30].mxu1 %v428_v17 }
 0x151   : > { %v527_v24 = vpop.f32.mrb[0].mxu0  ;;  %v623_v25 = vpop.f32.mrb[0].mxu1 }
 0x152   : > { %v925_v26 = vadd.f32 %v1741_v23, %v527_v24  ;;  %v957_v27 = vadd.f32 %v1741_v23, %v623_v25  ;;  %v529_v28 = vpop.f32.mrb[1].mxu0  ;;  %v625_v29 = vpop.f32.mrb[1].mxu1 }
 0x153   : > { %v926_v30 = vadd.f32 %v1743_v0, %v529_v28  ;;  %v958_v31 = vadd.f32 %v1743_v0, %v625_v29 }
 0x154   : > { %989 = vst [vmem:[%s1749_s11] sm:$0xff] %v925_v26  ;;  %1021 = vst [vmem:[%s1749_s11 + $0x100] sm:$0xff] %v957_v27 }
 0x155   : > { %990 = vst [vmem:[%s1749_s11 + $0x8] sm:$0xff] %v926_v30  ;;  %1022 = vst [vmem:[%s1749_s11 + $0x108] sm:$0xff] %v958_v31  ;;  %v533_v32 = vpop.f32.mrb[2].mxu0  ;;  %v629_v33 = vpop.f32.mrb[2].mxu1 }
 0x156   : > { %v927_v34 = vadd.f32 %v1741_v23, %v533_v32  ;;  %v959_v35 = vadd.f32 %v1741_v23, %v629_v33  ;;  %v535_v36 = vpop.f32.mrb[3].mxu0  ;;  %v631_v37 = vpop.f32.mrb[3].mxu1 }
 0x157   : > { %v928_v38 = vadd.f32 %v1743_v0, %v535_v36  ;;  %v960_v39 = vadd.f32 %v1743_v0, %v631_v37 }
 0x158   : > { %991 = vst [vmem:[%s1749_s11 + $0x10] sm:$0xff] %v927_v34  ;;  %1023 = vst [vmem:[%s1749_s11 + $0x110] sm:$0xff] %v959_v35 }
 0x159   : > { %992 = vst [vmem:[%s1749_s11 + $0x18] sm:$0xff] %v928_v38  ;;  %1024 = vst [vmem:[%s1749_s11 + $0x118] sm:$0xff] %v960_v39  ;;  %v539_v40 = vpop.f32.mrb[4].mxu0  ;;  %v635_v41 = vpop.f32.mrb[4].mxu1 }
 0x15a   : > { %v929_v42 = vadd.f32 %v1741_v23, %v539_v40  ;;  %v961_v43 = vadd.f32 %v1741_v23, %v635_v41  ;;  %v541_v44 = vpop.f32.mrb[5].mxu0  ;;  %v637_v45 = vpop.f32.mrb[5].mxu1 }
 0x15b   : > { %v930_v46 = vadd.f32 %v1743_v0, %v541_v44  ;;  %v962_v47 = vadd.f32 %v1743_v0, %v637_v45 }
 0x15c   : > { %993 = vst [vmem:[%s1749_s11 + $0x20] sm:$0xff] %v929_v42  ;;  %1025 = vst [vmem:[%s1749_s11 + $0x120] sm:$0xff] %v961_v43 }
 0x15d   : > { %994 = vst [vmem:[%s1749_s11 + $0x28] sm:$0xff] %v930_v46  ;;  %1026 = vst [vmem:[%s1749_s11 + $0x128] sm:$0xff] %v962_v47  ;;  %v545_v48 = vpop.f32.mrb[6].mxu0  ;;  %v641_v49 = vpop.f32.mrb[6].mxu1 }
 0x15e   : > { %v931_v50 = vadd.f32 %v1741_v23, %v545_v48  ;;  %v963_v51 = vadd.f32 %v1741_v23, %v641_v49  ;;  %v547_v52 = vpop.f32.mrb[7].mxu0  ;;  %v643_v53 = vpop.f32.mrb[7].mxu1 }
 0x15f   : > { %v932_v54 = vadd.f32 %v1743_v0, %v547_v52  ;;  %v964_v55 = vadd.f32 %v1743_v0, %v643_v53 }
 0x160   : > { %995 = vst [vmem:[%s1749_s11 + $0x30] sm:$0xff] %v931_v50  ;;  %1027 = vst [vmem:[%s1749_s11 + $0x130] sm:$0xff] %v963_v51 }
 0x161   : > { %996 = vst [vmem:[%s1749_s11 + $0x38] sm:$0xff] %v932_v54  ;;  %1028 = vst [vmem:[%s1749_s11 + $0x138] sm:$0xff] %v964_v55  ;;  %v551_v56 = vpop.f32.mrb[8].mxu0  ;;  %v647_v57 = vpop.f32.mrb[8].mxu1 }
 0x162   : > { %v933_v58 = vadd.f32 %v1741_v23, %v551_v56  ;;  %v965_v59 = vadd.f32 %v1741_v23, %v647_v57  ;;  %v553_v60 = vpop.f32.mrb[9].mxu0  ;;  %v649_v61 = vpop.f32.mrb[9].mxu1 }
 0x163   : > { %v934_v62 = vadd.f32 %v1743_v0, %v553_v60  ;;  %v966_v63 = vadd.f32 %v1743_v0, %v649_v61 }
 0x164   : > { %997 = vst [vmem:[%s1749_s11 + $0x40] sm:$0xff] %v933_v58  ;;  %1029 = vst [vmem:[%s1749_s11 + $0x140] sm:$0xff] %v965_v59 }
 0x165   : > { %998 = vst [vmem:[%s1749_s11 + $0x48] sm:$0xff] %v934_v62  ;;  %1030 = vst [vmem:[%s1749_s11 + $0x148] sm:$0xff] %v966_v63  ;;  %v557_v1 = vpop.f32.mrb[10].mxu0  ;;  %v653_v2 = vpop.f32.mrb[10].mxu1 }
 0x166   : > { %v935_v3 = vadd.f32 %v1741_v23, %v557_v1  ;;  %v967_v4 = vadd.f32 %v1741_v23, %v653_v2  ;;  %v559_v5 = vpop.f32.mrb[11].mxu0  ;;  %v655_v6 = vpop.f32.mrb[11].mxu1 }
 0x167   : > { %v936_v7 = vadd.f32 %v1743_v0, %v559_v5  ;;  %v968_v8 = vadd.f32 %v1743_v0, %v655_v6 }
 0x168   : > { %999 = vst [vmem:[%s1749_s11 + $0x50] sm:$0xff] %v935_v3  ;;  %1031 = vst [vmem:[%s1749_s11 + $0x150] sm:$0xff] %v967_v4 }
 0x169   : > { %1000 = vst [vmem:[%s1749_s11 + $0x58] sm:$0xff] %v936_v7  ;;  %1032 = vst [vmem:[%s1749_s11 + $0x158] sm:$0xff] %v968_v8  ;;  %v563_v9 = vpop.f32.mrb[12].mxu0  ;;  %v659_v10 = vpop.f32.mrb[12].mxu1 }
 0x16a   : > { %v937_v11 = vadd.f32 %v1741_v23, %v563_v9  ;;  %v969_v12 = vadd.f32 %v1741_v23, %v659_v10  ;;  %v565_v13 = vpop.f32.mrb[13].mxu0  ;;  %v661_v14 = vpop.f32.mrb[13].mxu1 }
 0x16b   : > { %v938_v15 = vadd.f32 %v1743_v0, %v565_v13  ;;  %v970_v16 = vadd.f32 %v1743_v0, %v661_v14 }
 0x16c   : > { %1001 = vst [vmem:[%s1749_s11 + $0x60] sm:$0xff] %v937_v11  ;;  %1033 = vst [vmem:[%s1749_s11 + $0x160] sm:$0xff] %v969_v12 }
 0x16d   : > { %1002 = vst [vmem:[%s1749_s11 + $0x68] sm:$0xff] %v938_v15  ;;  %1034 = vst [vmem:[%s1749_s11 + $0x168] sm:$0xff] %v970_v16  ;;  %v569_v17 = vpop.f32.mrb[14].mxu0  ;;  %v665_v18 = vpop.f32.mrb[14].mxu1 }
 0x16e   : > { %v939_v19 = vadd.f32 %v1741_v23, %v569_v17  ;;  %v971_v20 = vadd.f32 %v1741_v23, %v665_v18  ;;  %v571_v21 = vpop.f32.mrb[15].mxu0  ;;  %v667_v22 = vpop.f32.mrb[15].mxu1 }
 0x16f   : > { %v940_v24 = vadd.f32 %v1743_v0, %v571_v21  ;;  %v972_v25 = vadd.f32 %v1743_v0, %v667_v22 }
 0x170   : > { %1003 = vst [vmem:[%s1749_s11 + $0x70] sm:$0xff] %v939_v19  ;;  %1035 = vst [vmem:[%s1749_s11 + $0x170] sm:$0xff] %v971_v20 }
 0x171   : > { %1004 = vst [vmem:[%s1749_s11 + $0x78] sm:$0xff] %v940_v24  ;;  %1036 = vst [vmem:[%s1749_s11 + $0x178] sm:$0xff] %v972_v25  ;;  %v575_v26 = vpop.f32.mrb[16].mxu0  ;;  %v671_v27 = vpop.f32.mrb[16].mxu1 }
 0x172   : > { %v941_v28 = vadd.f32 %v1741_v23, %v575_v26  ;;  %v973_v29 = vadd.f32 %v1741_v23, %v671_v27  ;;  %v577_v30 = vpop.f32.mrb[17].mxu0  ;;  %v673_v31 = vpop.f32.mrb[17].mxu1 }
 0x173   : > { %v942_v32 = vadd.f32 %v1743_v0, %v577_v30  ;;  %v974_v33 = vadd.f32 %v1743_v0, %v673_v31 }
 0x174   : > { %1005 = vst [vmem:[%s1749_s11 + $0x80] sm:$0xff] %v941_v28  ;;  %1037 = vst [vmem:[%s1749_s11 + $0x180] sm:$0xff] %v973_v29 }
 0x175   : > { %1006 = vst [vmem:[%s1749_s11 + $0x88] sm:$0xff] %v942_v32  ;;  %1038 = vst [vmem:[%s1749_s11 + $0x188] sm:$0xff] %v974_v33  ;;  %v581_v34 = vpop.f32.mrb[18].mxu0  ;;  %v677_v35 = vpop.f32.mrb[18].mxu1 }
 0x176   : > { %v943_v36 = vadd.f32 %v1741_v23, %v581_v34  ;;  %v975_v37 = vadd.f32 %v1741_v23, %v677_v35  ;;  %v583_v38 = vpop.f32.mrb[19].mxu0  ;;  %v679_v39 = vpop.f32.mrb[19].mxu1 }
 0x177   : > { %v944_v40 = vadd.f32 %v1743_v0, %v583_v38  ;;  %v976_v41 = vadd.f32 %v1743_v0, %v679_v39 }
 0x178   : > { %1007 = vst [vmem:[%s1749_s11 + $0x90] sm:$0xff] %v943_v36  ;;  %1039 = vst [vmem:[%s1749_s11 + $0x190] sm:$0xff] %v975_v37 }
 0x179   : > { %1008 = vst [vmem:[%s1749_s11 + $0x98] sm:$0xff] %v944_v40  ;;  %1040 = vst [vmem:[%s1749_s11 + $0x198] sm:$0xff] %v976_v41  ;;  %v587_v42 = vpop.f32.mrb[20].mxu0  ;;  %v683_v43 = vpop.f32.mrb[20].mxu1 }
 0x17a   : > { %v945_v44 = vadd.f32 %v1741_v23, %v587_v42  ;;  %v977_v45 = vadd.f32 %v1741_v23, %v683_v43  ;;  %v589_v46 = vpop.f32.mrb[21].mxu0  ;;  %v685_v47 = vpop.f32.mrb[21].mxu1 }
 0x17b   : > { %v946_v48 = vadd.f32 %v1743_v0, %v589_v46  ;;  %v978_v49 = vadd.f32 %v1743_v0, %v685_v47 }
 0x17c   : > { %1009 = vst [vmem:[%s1749_s11 + $0xa0] sm:$0xff] %v945_v44  ;;  %1041 = vst [vmem:[%s1749_s11 + $0x1a0] sm:$0xff] %v977_v45 }
 0x17d   : > { %1010 = vst [vmem:[%s1749_s11 + $0xa8] sm:$0xff] %v946_v48  ;;  %1042 = vst [vmem:[%s1749_s11 + $0x1a8] sm:$0xff] %v978_v49  ;;  %v593_v50 = vpop.f32.mrb[22].mxu0  ;;  %v689_v51 = vpop.f32.mrb[22].mxu1 }
 0x17e   : > { %v947_v52 = vadd.f32 %v1741_v23, %v593_v50  ;;  %v979_v53 = vadd.f32 %v1741_v23, %v689_v51  ;;  %v595_v54 = vpop.f32.mrb[23].mxu0  ;;  %v691_v55 = vpop.f32.mrb[23].mxu1 }
 0x17f   : > { %v948_v56 = vadd.f32 %v1743_v0, %v595_v54  ;;  %v980_v57 = vadd.f32 %v1743_v0, %v691_v55 }
 0x180   : > { %1011 = vst [vmem:[%s1749_s11 + $0xb0] sm:$0xff] %v947_v52  ;;  %1043 = vst [vmem:[%s1749_s11 + $0x1b0] sm:$0xff] %v979_v53 }
 0x181   : > { %1012 = vst [vmem:[%s1749_s11 + $0xb8] sm:$0xff] %v948_v56  ;;  %1044 = vst [vmem:[%s1749_s11 + $0x1b8] sm:$0xff] %v980_v57  ;;  %v599_v58 = vpop.f32.mrb[24].mxu0  ;;  %v695_v59 = vpop.f32.mrb[24].mxu1 }
 0x182   : > { %v949_v60 = vadd.f32 %v1741_v23, %v599_v58  ;;  %v981_v61 = vadd.f32 %v1741_v23, %v695_v59  ;;  %v601_v62 = vpop.f32.mrb[25].mxu0  ;;  %v697_v63 = vpop.f32.mrb[25].mxu1 }
 0x183   : > { %v950_v1 = vadd.f32 %v1743_v0, %v601_v62  ;;  %v982_v2 = vadd.f32 %v1743_v0, %v697_v63 }
 0x184   : > { %1013 = vst [vmem:[%s1749_s11 + $0xc0] sm:$0xff] %v949_v60  ;;  %1045 = vst [vmem:[%s1749_s11 + $0x1c0] sm:$0xff] %v981_v61 }
 0x185   : > { %1014 = vst [vmem:[%s1749_s11 + $0xc8] sm:$0xff] %v950_v1  ;;  %1046 = vst [vmem:[%s1749_s11 + $0x1c8] sm:$0xff] %v982_v2  ;;  %v605_v3 = vpop.f32.mrb[26].mxu0  ;;  %v701_v4 = vpop.f32.mrb[26].mxu1 }
 0x186   : > { %v951_v5 = vadd.f32 %v1741_v23, %v605_v3  ;;  %v983_v6 = vadd.f32 %v1741_v23, %v701_v4  ;;  %v607_v7 = vpop.f32.mrb[27].mxu0  ;;  %v703_v8 = vpop.f32.mrb[27].mxu1 }
 0x187   : > { %v952_v9 = vadd.f32 %v1743_v0, %v607_v7  ;;  %v984_v10 = vadd.f32 %v1743_v0, %v703_v8 }
 0x188   : > { %1015 = vst [vmem:[%s1749_s11 + $0xd0] sm:$0xff] %v951_v5  ;;  %1047 = vst [vmem:[%s1749_s11 + $0x1d0] sm:$0xff] %v983_v6 }
 0x189   : > { %1016 = vst [vmem:[%s1749_s11 + $0xd8] sm:$0xff] %v952_v9  ;;  %1048 = vst [vmem:[%s1749_s11 + $0x1d8] sm:$0xff] %v984_v10  ;;  %v611_v11 = vpop.f32.mrb[28].mxu0  ;;  %v707_v12 = vpop.f32.mrb[28].mxu1 }
 0x18a   : > { %v953_v13 = vadd.f32 %v1741_v23, %v611_v11  ;;  %v985_v14 = vadd.f32 %v1741_v23, %v707_v12  ;;  %v613_v15 = vpop.f32.mrb[29].mxu0  ;;  %v709_v16 = vpop.f32.mrb[29].mxu1 }
 0x18b   : > { %v954_v17 = vadd.f32 %v1743_v0, %v613_v15  ;;  %v986_v18 = vadd.f32 %v1743_v0, %v709_v16 }
 0x18c   : > { %1017 = vst [vmem:[%s1749_s11 + $0xe0] sm:$0xff] %v953_v13  ;;  %1049 = vst [vmem:[%s1749_s11 + $0x1e0] sm:$0xff] %v985_v14 }
 0x18d   : > { %1018 = vst [vmem:[%s1749_s11 + $0xe8] sm:$0xff] %v954_v17  ;;  %1050 = vst [vmem:[%s1749_s11 + $0x1e8] sm:$0xff] %v986_v18  ;;  %v617_v19 = vpop.f32.mrb[30].mxu0  ;;  %v713_v20 = vpop.f32.mrb[30].mxu1 }
 0x18e   : > { %v955_v21 = vadd.f32 %v1741_v23, %v617_v19  ;;  %v987_v22 = vadd.f32 %v1741_v23, %v713_v20  ;;  %v619_v24 = vpop.f32.mrb[31].mxu0  ;;  %v715_v25 = vpop.f32.mrb[31].mxu1 }
 0x18f   : > { %v956_v26 = vadd.f32 %v1743_v0, %v619_v24  ;;  %v988_v27 = vadd.f32 %v1743_v0, %v715_v25 }
 0x190   : > { %1019 = vst [vmem:[%s1749_s11 + $0xf0] sm:$0xff] %v955_v21  ;;  %1051 = vst [vmem:[%s1749_s11 + $0x1f0] sm:$0xff] %v987_v22 }
 0x191   : > { %1020 = vst [vmem:[%s1749_s11 + $0xf8] sm:$0xff] %v956_v26  ;;  %1052 = vst [vmem:[%s1749_s11 + $0x1f8] sm:$0xff] %v988_v27 }
 0x192   : > { %1406 = shalt.err (!%p1403_p12)
}
 0x193   : > { %s1407_s4 = scalar_lea.hbm %s1872_s15, 8192  ;;  %s1411_s25 = scalar_lea.hbm %s1933_s3, 24576 }
 0x194   : > { %p1408_p2 = scmp.ne.s32.totalorder %s1872_s15, %s1407_s4  ;;  %p1412_p1 = scmp.lt.u32.totalorder %s1872_s15, %s1933_s3 }
 0x195   : > { %p1413_p8 = scmp.lt.u32.totalorder %s1411_s25, %s1407_s4  ;;  %p1415_p11 = scmp.lt.u32.totalorder %s1407_s4, %s1872_s15 }
 0x196   : > { %p1409_p7 = pnand %p1408_p2, %p1952_p4 }
 0x197   : > { %p1414_p9 = por %p1413_p8, %p1412_p1 }
 0x198   : > { %p1410_p10 = pneg %p1409_p7 }
 0x199   : > { %p1416_p13 = por %p1415_p11, %p1414_p9 }
 0x19b   : > { %p1417_p0 = pnand %p1416_p13, %p1410_p10 }
 0x19d   : > { %1420 = shalt.err (!%p1417_p0)
}
 0x19e   : > { %s1490_s11 = smov 256   ;;  %s1491_s19 = smov 768  }
 0x19f   : > { %s1492_s10 = smov 16  }
 0x1a0   : > { %1259 = dma.vmem_to_hbm [thread:$0]  (%p1952_p4), %s1876_s5, 8192, %s1872_s15, %s1054_s21, %s1490_s11, %s1491_s19, %s1492_s10  }
 0x1a1 PF: > { %p1276_p5 = scmp.ge.s32.totalorder %s1479_s17, 2  ;;  %s1085_s27 = sand.u32 1, %s1459_s12  }
 0x1a2   : > { %p1953_p3 = scmp.ne.s32.totalorder %s1944_s24, 0  ;;  %s1086_s26 = scalar_lea.sflag [#allocation5], %s1085_s27 }
 0x1a4   : > { %p1270_p6 = pnand %p1276_p5, %p1953_p3 }
 0x1a6   : > { %1454 = dma.done.wait (!%p1270_p6), %s1086_s26, 8192  }
 0x1a7   : > { %1456 = vsyncadd (!%p1270_p6), %s1086_s26, 4294959104  ;;  %s20_s17 = sadd.s32 1, %s1479_s17   ;;  %s1954_s12 = smov %s1463_s13 }
 0x1a8   : > { %p17_p12 = scmp.ge.s32.totalorder %s20_s17, 5   ;;  %s1955_s13 = smov %s1467_s14 }
 0x1a9   : > { %s1956_s14 = smov %s1623_s18  ;;  %s1957_s15 = smov %s1475_s16 }
 0x1aa   : > { %s1958_s16 = smov %s1960_s30  ;;  %19 = sbr.rel (!%p17_p12) target bundleno = 7 (0x7), region = 94 }
 0x1b1   :  { %1091 = vsyncpa [#allocation4], 1 }
 0x1b2   :  { %1093 = vsyncpa [#allocation4 + $0x1], 1 }
 0x1b3   :  { %1094 = vsyncpa [#allocation7], 1 }
 0x1b4   :  { %1096 = vsyncpa [#allocation7 + $0x1], 1 }
 0x1b5   :  { %1097 = vsyncpa [#allocation5], 1 }
 0x1b6   :  { %1099 = vsyncpa [#allocation5 + $0x1], 1 }

</bundles_post_ra>
